<compile_context>
chip_gen: v5e
topology: v5e:2x2
jax: 0.10.0
libtpu: 0.0.40
codegen_flags: <defaults>
</compile_context>

<pallas_src>
import functools

import jax
import jax.numpy as jnp
from jax import lax
from jax.experimental import pallas as pl
from jax.experimental.pallas import tpu as pltpu


def _round_up(x, m):
    return ((x + m - 1) // m) * m


def _make_content_agg_kernel(num_embed):
    """One row-tile: fused concat + Linear + bias + ReLU + L2 normalize."""

    def kernel(*refs):
        # refs: (x_0, ..., x_{K-1}, w, b, o)
        #   x_k: (bm, D)   w: (K*D, E)   b: (1, E)   o: (bm, E)
        x_refs = refs[:num_embed]
        w_ref = refs[num_embed]
        b_ref = refs[num_embed + 1]
        o_ref = refs[num_embed + 2]

        # Build [bm, K*D] with lane concats (XLU slot) and hit the MXU once
        # with a wide contraction instead of K shallow dots + VPU add chain.
        if num_embed > 1:
            x = jnp.concatenate([r[...] for r in x_refs], axis=-1)
        else:
            x = x_refs[0][...]
        acc = jnp.dot(x, w_ref[...], preferred_element_type=jnp.float32)

        y = jnp.maximum(acc + b_ref[...].astype(jnp.float32), 0.0)  # bias + ReLU

        # F.normalize(p=2, dim=-1, eps=1e-12): y / max(||y||, 1e-12)
        #   == y * rsqrt(max(sum(y^2), 1e-24)); rsqrt runs on the EUP slot.
        sumsq = jnp.sum(y * y, axis=-1, keepdims=True)
        inv = lax.rsqrt(jnp.maximum(sumsq, 1e-24))
        o_ref[...] = (y * inv).astype(o_ref.dtype)

    return kernel


@functools.partial(jax.jit, static_argnames=("block_rows", "compute_dtype"))
def content_agg_forward(embed_list, weight, bias, *, block_rows=4096,
                        compute_dtype=None):
    """Content_Agg forward (eval mode).

    embed_list:    sequence of num_embed arrays, each [N, embed_dim]
    weight:        torch Linear layout [embed_dim, embed_dim * num_embed]
    bias:          [embed_dim]
    block_rows:    row-tile size (HBM-bound kernel -> big tiles amortize the
                   ~0.35us per-grid-step overhead)
    compute_dtype: e.g. "bfloat16" to halve input/weight HBM traffic;
                   accumulation + epilogue stay f32, output keeps input dtype.
    returns:       [N, embed_dim]
    """
    embed_list = list(embed_list)
    num_embed = len(embed_list)
    n, d = embed_list[0].shape
    e = weight.shape[0]
    out_dtype = embed_list[0].dtype

    # Weight as [K*D, E] (contiguous view of W.T); optional low-precision cast.
    w_in = weight.T
    if compute_dtype is not None:
        cdt = jnp.dtype(compute_dtype)
        embed_list = [x.astype(cdt) for x in embed_list]
        w_in = w_in.astype(cdt)
    b2 = bias.reshape(1, e).astype(jnp.float32)

    # ---- row-tile selection ----
    # Big tiles (default 4096) for HBM-roofline; clamp so the grid has >= 2
    # steps when N allows it (v7x megacore splits the "parallel" axis).
    n_pad = _round_up(n, 8)
    bm = min(int(block_rows), n_pad)
    if n_pad >= 16:
        bm = min(bm, _round_up(pl.cdiv(n_pad, 2), 8))
    bm = max(8, _round_up(bm, 8))
    grid = (pl.cdiv(n, bm),)

    # ---- scoped-VMEM budget (covers v5e's 16 MiB default at big tiles;
    #      capped under v7x's 64 MiB physical) ----
    in_item = jnp.dtype(embed_list[0].dtype).itemsize
    w_item = jnp.dtype(w_in.dtype).itemsize
    out_item = jnp.dtype(out_dtype).itemsize
    per_step = num_embed * bm * d * in_item + bm * e * out_item
    resident = num_embed * d * e * w_item + e * 4
    vmem_needed = 2 * (per_step + resident)          # double buffering
    vmem_limit = int(min(48 << 20, max(32 << 20, 2 * vmem_needed)))

    in_specs = [pl.BlockSpec((bm, d), lambda i: (i, 0)) for _ in range(num_embed)]
    in_specs.append(pl.BlockSpec((num_embed * d, e), lambda i: (0, 0)))  # W resident
    in_specs.append(pl.BlockSpec((1, e), lambda i: (0, 0)))              # bias resident

    return pl.pallas_call(
        _make_content_agg_kernel(num_embed),
        out_shape=jax.ShapeDtypeStruct((n, e), out_dtype),
        grid_spec=pltpu.PrefetchScalarGridSpec(
            num_scalar_prefetch=0,
            grid=grid,
            in_specs=in_specs,
            out_specs=pl.BlockSpec((bm, e), lambda i: (i, 0)),
        ),
        compiler_params=pltpu.CompilerParams(
            dimension_semantics=("parallel",),   # row axis independent -> megacore
            vmem_limit_bytes=vmem_limit,
        ),
    )(*embed_list, w_in, b2)


def reference_forward(embed_list, weight, bias):
    x = jnp.concatenate(embed_list, axis=-1)
    y = jnp.maximum(x @ weight.T + bias, 0.0)
    norm = jnp.maximum(jnp.linalg.norm(y, axis=-1, keepdims=True), 1e-12)
    return y / norm


if __name__ == "__main__":
    # Shapes consistent with the module: embed_dim=32, num_embed=4.
    embed_dim = 32
    num_embed = 4
    n = 8

    key = jax.random.PRNGKey(0)
    k_embeds, k_w, k_b = jax.random.split(key, 3)

    embed_list = [
        jax.random.normal(jax.random.fold_in(k_embeds, i),
                          (n, embed_dim), dtype=jnp.float32)
        for i in range(num_embed)
    ]
    # torch Linear params: weight [out, in], bias [out]
    w = jax.random.normal(k_w, (embed_dim, embed_dim * num_embed),
                          dtype=jnp.float32) * 0.05
    b = jax.random.normal(k_b, (embed_dim,), dtype=jnp.float32) * 0.05

    # 1) f32 path, tiny batch (single grid step).
    ref = reference_forward(embed_list, w, b)
    out = jax.block_until_ready(content_agg_forward(embed_list, w, b))
    assert out.shape == (n, embed_dim)
    assert jnp.allclose(out, ref, atol=1e-5, rtol=1e-5), "f32 mismatch vs reference"

    # 2) f32 path, larger batch -> >= 2 grid steps with a partial last tile.
    n2 = 100
    embed_list2 = [
        jax.random.normal(jax.random.fold_in(k_embeds, 10 + i),
                          (n2, embed_dim), dtype=jnp.float32)
        for i in range(num_embed)
    ]
    ref2 = reference_forward(embed_list2, w, b)
    out2 = jax.block_until_ready(content_agg_forward(embed_list2, w, b))
    assert out2.shape == (n2, embed_dim)
    assert jnp.allclose(out2, ref2, atol=1e-5, rtol=1e-5), "multi-tile mismatch"

    # 3) bf16 input/weight path (HBM-traffic win); f32 accumulate + epilogue.
    out_bf16 = jax.block_until_ready(
        content_agg_forward(embed_list2, w, b, compute_dtype="bfloat16"))
    assert out_bf16.shape == (n2, embed_dim)
    assert jnp.allclose(out_bf16, ref2, atol=5e-2, rtol=5e-2), "bf16 mismatch"

    print("KERNEL_OK")
</pallas_src>

<mosaic_0001>
module attributes {stable_mosaic.version = 11 : i64} {
  func.func @kernel(%arg0: i32, %arg1: memref<8x32xf32, #tpu.memory_space<vmem>>, %arg2: memref<8x32xf32, #tpu.memory_space<vmem>>, %arg3: memref<8x32xf32, #tpu.memory_space<vmem>>, %arg4: memref<8x32xf32, #tpu.memory_space<vmem>>, %arg5: memref<128x32xf32, #tpu.memory_space<vmem>>, %arg6: memref<1x32xf32, #tpu.memory_space<vmem>>, %arg7: memref<8x32xf32, #tpu.memory_space<vmem>>) attributes {dimension_semantics = [#tpu.dimension_semantics<parallel>], iteration_bounds = array<i64: 1>, scalar_prefetch = 0 : i64, scratch_operands = 0 : i64, tpu.core_type = #tpu.core_type<tc>, window_params = [{transform_indices = @transform_0, window_bounds = array<i64: 8, 32>}, {transform_indices = @transform_1, window_bounds = array<i64: 8, 32>}, {transform_indices = @transform_2, window_bounds = array<i64: 8, 32>}, {transform_indices = @transform_3, window_bounds = array<i64: 8, 32>}, {pipeline_mode = #tpu.pipeline_mode<synchronous>, transform_indices = @transform_4, window_bounds = array<i64: 128, 32>}, {pipeline_mode = #tpu.pipeline_mode<synchronous>, transform_indices = @transform_5, window_bounds = array<i64: 1, 32>}, {transform_indices = @transform_6, window_bounds = array<i64: 8, 32>}]} {
    %c0 = arith.constant 0 : index
    %c0_0 = arith.constant 0 : index
    %0 = vector.load %arg1[%c0, %c0_0] : memref<8x32xf32, #tpu.memory_space<vmem>>, vector<8x32xf32>
    %c0_1 = arith.constant 0 : index
    %c0_2 = arith.constant 0 : index
    %1 = vector.load %arg2[%c0_1, %c0_2] : memref<8x32xf32, #tpu.memory_space<vmem>>, vector<8x32xf32>
    %c0_3 = arith.constant 0 : index
    %c0_4 = arith.constant 0 : index
    %2 = vector.load %arg3[%c0_3, %c0_4] : memref<8x32xf32, #tpu.memory_space<vmem>>, vector<8x32xf32>
    %c0_5 = arith.constant 0 : index
    %c0_6 = arith.constant 0 : index
    %3 = vector.load %arg4[%c0_5, %c0_6] : memref<8x32xf32, #tpu.memory_space<vmem>>, vector<8x32xf32>
    %4 = tpu.concatenate %0, %1, %2, %3 in 1 : vector<8x32xf32>, vector<8x32xf32>, vector<8x32xf32>, vector<8x32xf32> -> vector<8x128xf32>
    %c0_7 = arith.constant 0 : index
    %c0_8 = arith.constant 0 : index
    %5 = vector.load %arg5[%c0_7, %c0_8] : memref<128x32xf32, #tpu.memory_space<vmem>>, vector<128x32xf32>
    %cst = arith.constant dense<0.000000e+00> : vector<8x32xf32>
    %6 = tpu.matmul %4, %5, %cst {dimension_numbers = #tpu.dot_dimension_numbers<[1], [0], [0], [1], [0, 0, 1, 1], [], []>} : vector<8x128xf32>, vector<128x32xf32>, vector<8x32xf32> -> vector<8x32xf32>
    %c0_9 = arith.constant 0 : index
    %c0_10 = arith.constant 0 : index
    %7 = vector.load %arg6[%c0_9, %c0_10] : memref<1x32xf32, #tpu.memory_space<vmem>>, vector<1x32xf32>
    %8 = vector.broadcast %7 : vector<1x32xf32> to vector<8x32xf32>
    %9 = arith.addf %6, %8 : vector<8x32xf32>
    %cst_11 = arith.constant 0.000000e+00 : f32
    %10 = vector.broadcast %cst_11 : f32 to vector<8x32xf32>
    %11 = arith.maximumf %9, %10 : vector<8x32xf32>
    %12 = arith.mulf %11, %11 : vector<8x32xf32>
    %cst_12 = arith.constant dense<0.000000e+00> : vector<8xf32>
    %13 = vector.multi_reduction <add>, %12, %cst_12 [1] : vector<8x32xf32> to vector<8xf32>
    %14 = vector.shape_cast %13 : vector<8xf32> to vector<8x1xf32>
    %cst_13 = arith.constant 1.000000e-24 : f32
    %15 = vector.broadcast %cst_13 : f32 to vector<8x1xf32>
    %16 = arith.maximumf %14, %15 : vector<8x1xf32>
    %17 = math.rsqrt %16 : vector<8x1xf32>
    %18 = vector.broadcast %17 : vector<8x1xf32> to vector<8x32xf32>
    %19 = arith.mulf %11, %18 : vector<8x32xf32>
    %c0_14 = arith.constant 0 : index
    %c0_15 = arith.constant 0 : index
    %20 = vector.load %arg7[%c0_14, %c0_15] : memref<8x32xf32, #tpu.memory_space<vmem>>, vector<8x32xf32>
    tpu.vector_store %arg7[%c0_14, %c0_15], %19 {strides = array<i32>} : memref<8x32xf32, #tpu.memory_space<vmem>>, vector<8x32xf32>,
    return
  }
  func.func @transform_0(%arg0: i32) -> (i32, i32) {
    %c0_i32 = arith.constant 0 : i32
    %c0_i32_0 = arith.constant 0 : i32
    return %arg0, %c0_i32 : i32, i32
  }
  func.func @transform_1(%arg0: i32) -> (i32, i32) {
    %c0_i32 = arith.constant 0 : i32
    %c0_i32_0 = arith.constant 0 : i32
    return %arg0, %c0_i32 : i32, i32
  }
  func.func @transform_2(%arg0: i32) -> (i32, i32) {
    %c0_i32 = arith.constant 0 : i32
    %c0_i32_0 = arith.constant 0 : i32
    return %arg0, %c0_i32 : i32, i32
  }
  func.func @transform_3(%arg0: i32) -> (i32, i32) {
    %c0_i32 = arith.constant 0 : i32
    %c0_i32_0 = arith.constant 0 : i32
    return %arg0, %c0_i32 : i32, i32
  }
  func.func @transform_4(%arg0: i32) -> (i32, i32) {
    %c0_i32 = arith.constant 0 : i32
    %c0_i32_0 = arith.constant 0 : i32
    %c0_i32_1 = arith.constant 0 : i32
    return %c0_i32, %c0_i32_0 : i32, i32
  }
  func.func @transform_5(%arg0: i32) -> (i32, i32) {
    %c0_i32 = arith.constant 0 : i32
    %c0_i32_0 = arith.constant 0 : i32
    %c0_i32_1 = arith.constant 0 : i32
    return %c0_i32, %c0_i32_0 : i32, i32
  }
  func.func @transform_6(%arg0: i32) -> (i32, i32) {
    %c0_i32 = arith.constant 0 : i32
    %c0_i32_0 = arith.constant 0 : i32
    return %arg0, %c0_i32 : i32, i32
  }
}

</mosaic_0001>

<bundles_post_ra>
// kernel: content_agg_forward.1
= control target key start
LH: loop header
LB: loop body
LE: loop exit
PB: predicated region body
PF: predicated region fallthrough
CT: control target
= control target key end

     0   :  { %s153_s25 = smov 32   ;;  %s154_s30 = smov 96   ;;  %s261_s0 = inlined_call_operand.vmem [shape: f32[8,32], index: 0, kind: input, shape index: {}]   ;;  %s262_s1 = inlined_call_operand.vmem [shape: f32[8,32], index: 1, kind: input, shape index: {}]   ;;  %s263_s2 = inlined_call_operand.vmem [shape: f32[8,32], index: 2, kind: input, shape index: {}]   ;;  %s264_s3 = inlined_call_operand.vmem [shape: f32[8,32], index: 3, kind: input, shape index: {}]   ;;  %s265_s4 = inlined_call_operand.vmem [shape: f32[128,32], index: 4, kind: input, shape index: {}]   ;;  %s266_s5 = inlined_call_operand.vmem [shape: f32[1,32], index: 5, kind: input, shape index: {}]   ;;  %s267_s6 = inlined_call_operand.hbm [shape: f32[8,32], index: 6, kind: output, shape index: {}]  }
   0x1   :  { %v25_v0 = vld [vmem:[%s262_s1] sm:$0xff]  ;;  %v61_v2 = vld [vmem:[%s265_s4 + $0x78] sm:$0xff]  ;;  %v60_v3 = vld [vmem:[%s265_s4 + $0x70] sm:$0xff] }
   0x2   :  { %v27_v1 = vld [vmem:[%s264_s3] sm:$0xff]  ;;  %29 = vrot.lane.b32.xlu0 %v25_v0, %s153_s25  ;;  %66 = vmatpush.msra.mxu0 %v61_v2  ;;  %v59_v4 = vld [vmem:[%s265_s4 + $0x68] sm:$0xff] }
   0x3   :  { %37 = vrot.lane.b32.xlu1 %v27_v1, %s154_s30  ;;  %v58_v5 = vld [vmem:[%s265_s4 + $0x60] sm:$0xff] }
   0x4   :  { %67 = vmatpush.msra.mxu0 %v60_v3 }
   0x5   :  { %11 = vsyncpa [#allocation3], 0  ;;  %v26_v6 = vld [vmem:[%s263_s2] sm:$0xff]  ;;  %v57_v7 = vld [vmem:[%s265_s4 + $0x58] sm:$0xff]  ;;  %s155_s13 = smov 64   ;;  %vm40_vm0 = vcmask 261120  }
   0x6   :  { %68 = vmatpush.msra.mxu0 %v59_v4  ;;  %v56_v8 = vld [vmem:[%s265_s4 + $0x50] sm:$0xff]  ;;  %v55_v9 = vld [vmem:[%s265_s4 + $0x48] sm:$0xff]  ;;  %v54_v10 = vld [vmem:[%s265_s4 + $0x40] sm:$0xff]  ;;  %vm42_vm1 = vcmask 523264   ;;  %vm44_vm2 = vcmask 785408   ;;  %s111_s14 = sshll.u32 %s267_s6, 4  ;;  %s112_s14 = int_to_ptr.hbm [resolvable:$true] %s111_s14 }
   0x7   :  { %v53_v11 = vld [vmem:[%s265_s4 + $0x38] sm:$0xff]  ;;  %v52_v12 = vld [vmem:[%s265_s4 + $0x30] sm:$0xff]  ;;  %v51_v13 = vld [vmem:[%s265_s4 + $0x28] sm:$0xff] }
   0x8   :  { %69 = vmatpush.msra.mxu0 %v58_v5  ;;  %v50_v14 = vld [vmem:[%s265_s4 + $0x20] sm:$0xff]  ;;  %v49_v15 = vld [vmem:[%s265_s4 + $0x18] sm:$0xff]  ;;  %v48_v16 = vld [vmem:[%s265_s4 + $0x10] sm:$0xff] }
   0x9   :  { %v47_v17 = vld [vmem:[%s265_s4 + $0x8] sm:$0xff]  ;;  %v46_v18 = vld [vmem:[%s265_s4] sm:$0xff] }
   0xa   :  { %33 = vrot.lane.b32.xlu0 %v26_v6, %s155_s13  ;;  %70 = vmatpush.msra.mxu0 %v57_v7  ;;  %v24_v20 = vld [vmem:[%s261_s0] sm:$0xff]  ;;  %s156_s0 = smov [#allocation2]  }
   0xb   :  { %v124_v26 = vld [vmem:[%s266_s5] ss:$0 sm:$0xff]  ;;  %s109_s4 = sshll.u32 %s156_s0, 4  ;;  %s110_s4 = int_to_ptr.vmem [resolvable:$true] %s109_s4 }
   0xc   :  { %71 = vmatpush.msra.mxu0 %v56_v8 }
   0xe   :  { %72 = vmatpush.msra.mxu0 %v55_v9 }
  0x10   :  { %73 = vmatpush.msra.mxu0 %v54_v10 }
  0x12   :  { %74 = vmatpush.msra.mxu0 %v53_v11 }
  0x14   :  { %75 = vmatpush.msra.mxu0 %v52_v12 }
  0x16   :  { %76 = vmatpush.msra.mxu0 %v51_v13 }
  0x18   :  { %77 = vmatpush.msra.mxu0 %v50_v14 }
  0x1a   :  { %78 = vmatpush.msra.mxu0 %v49_v15 }
  0x1c   :  { %79 = vmatpush.msra.mxu0 %v48_v16 }
  0x1e   :  { %80 = vmatpush.msra.mxu0 %v47_v17 }
  0x20   :  { %81 = vmatpush.msra.mxu0 %v46_v18 }
  0x74   :  { %v30_v19 = vpop.permute.xlu0 %29 }
  0x75   :  { %v38_v21 = vpop.permute.xlu1 %37  ;;  %v41_v22 = vsel %vm40_vm0, %v24_v20, %v30_v19 }
  0x7c   :  { %v34_v23 = vpop.permute.xlu0 %33 }
  0x7d   :  { %v43_v24 = vsel %vm42_vm1, %v41_v22, %v34_v23 }
  0x7e   :  { %v45_v25 = vsel %vm44_vm2, %v43_v24, %v38_v21 }
  0x7f   :  { %82 = vmatmul.f32.vlgmr.msra.gmra.mxu0 %v45_v25 }
  0xfc   :  { %v83_v27 = vpop.f32.mrf.mxu0 }
  0xfd   :  { %v84_v28 = vadd.f32 %v124_v26, %v83_v27 }
  0xff   :  { %v86_v29 = vmax.f32 %v84_v28, 0.0 }
 0x101   :  { %v87_v30 = vmul.f32 %v86_v29, %v86_v29 }
 0x103   :  { %v88_v31 = vsel %vm40_vm0, %v87_v30, 0.0 }
 0x104   :  { %89 = vadd.xlane.f32.xlu1 %v88_v31 }
 0x177   :  { %v90_v32 = vpop.xlane.xlu1 %89 }
 0x178   :  { %v91_v33 = vmax.f32 %v90_v32, 1e-24 }
 0x17a   :  { %125 = vrsqrt.f32 %v91_v33  ;;  %vm98_vm4 = vweird.f32 %v91_v33 }
 0x180   :  { %v126_v34 = vpop.eup %125 }
 0x181   :  { %v93_v35 = vmul.f32 %v126_v34, %v91_v33  ;;  %vm99_vm3 = vweird.f32 %v126_v34 }
 0x182   :  { %vm100_vm5 = vmor %vm98_vm4, %vm99_vm3 }
 0x183   :  { %v94_v36 = vmul.f32 %v126_v34, %v93_v35 }
 0x185   :  { %v95_v37 = vmul.f32 0.5, %v94_v36 }
 0x187   :  { %v96_v38 = vsub.f32 1.5, %v95_v37 }
 0x189   :  { %v97_v39 = vmul.f32 %v126_v34, %v96_v38 }
 0x18b   :  { %v101_v40 = vsel %vm100_vm5, %v126_v34, %v97_v39 }
 0x18c   :  { %v102_v41 = vmul.f32 %v101_v40, %v86_v29 }
 0x18e   :  { %103 = vst.msk [vmem:[#allocation2] sm:$0xff] %vm40_vm0, %v102_v41 }
 0x18f   :  { %114 = dma.vmem_to_hbm [thread:$0]  %s110_s4, 128, %s112_s14, [#allocation3]  }
 0x190   :  { %151 = dma.done.wait [#allocation3], 128  }
 0x191   :  { %152 = vsyncadd [#allocation3], 4294967168 }
 0x192   :  { %119 = vsyncpa [#allocation3], 1 }

</bundles_post_ra>
